<compile_context>
chip_gen: v7x
topology: tpu7x:2x2x1
jax: 0.10.0
libtpu: 0.0.40
codegen_flags: <defaults>
</compile_context>

<pallas_src>
import jax
import jax.numpy as jnp
from jax import lax
from jax.experimental import pallas as pl
from jax.experimental.pallas import tpu as pltpu


# ----------------------------------------------------------------------------
# Kernel: one (tm, tn) output tile of sigmoid(z @ z.T)
# ----------------------------------------------------------------------------
def _inner_product_decoder_kernel(zr_ref, zc_ref, out_ref):
    zr = zr_ref[...]                                   # [tm, Dp] row block (bf16)
    zc = zc_ref[...]                                   # [tn, Dp] col block (bf16)
    # Contract on the feature axis directly (MXU, f32 accumulation).
    s = lax.dot_general(zr, zc, (((1,), (1,)), ((), ())),
                        preferred_element_type=jnp.float32)       # [tm, tn] f32
    # Exact sigmoid with a single EUP transcendental: sig(x) = 0.5*tanh(x/2)+0.5
    out_ref[...] = (0.5 * jnp.tanh(0.5 * s) + 0.5).astype(out_ref.dtype)


def _choose_tile(n, want):
    """Largest 128-multiple tile <= `want` such that the grid axis has extent
    >= 2 whenever n allows it (keeps both v7x TensorCores busy for small N)."""
    t = want
    while t > 128 and pl.cdiv(n, t) < 2:
        t //= 2
    return max(t, 128)


# ----------------------------------------------------------------------------
# Wrapper
# ----------------------------------------------------------------------------
def inner_product_decoder(z, *, dropout=0.0, training=False,
                          tile_m=1024, tile_n=1024,
                          compute_dtype=jnp.bfloat16,
                          out_dtype=jnp.float32):
    """adj = sigmoid(z @ z.T); dropout is identity in eval mode."""
    if training and dropout > 0.0:
        # TODO(synk): training-mode dropout (pltpu.prng_* Bernoulli mask applied
        #             to z before the matmul) is not implemented.
        raise NotImplementedError("training-mode dropout not implemented")

    z = jnp.asarray(z)
    n, d = z.shape

    tile_m = _choose_tile(n, tile_m)
    tile_n = _choose_tile(n, tile_n)
    gm = pl.cdiv(n, tile_m)
    gn = pl.cdiv(n, tile_n)

    # Pad z only (O(N*D), negligible): rows up to full tile coverage so input
    # blocks never read out of bounds, feature axis up to a 128-lane multiple
    # (zero columns don't change the inner products).  The N x N output is NOT
    # padded -> no post-kernel slice copy; edge output blocks are masked.
    n_rows_pad = max(gm * tile_m, gn * tile_n)
    d_pad = pl.cdiv(max(d, 128), 128) * 128
    if (n_rows_pad, d_pad) != (n, d):
        zp = (jnp.zeros((n_rows_pad, d_pad), compute_dtype)
              .at[:n, :d].set(z.astype(compute_dtype)))
    else:
        zp = z.astype(compute_dtype)

    adj = pl.pallas_call(
        _inner_product_decoder_kernel,
        grid=(gm, gn),
        in_specs=[
            pl.BlockSpec((tile_m, d_pad), lambda i, j: (i, 0)),  # row block of z
            pl.BlockSpec((tile_n, d_pad), lambda i, j: (j, 0)),  # col block of z
        ],
        out_specs=pl.BlockSpec((tile_m, tile_n), lambda i, j: (i, j)),
        out_shape=jax.ShapeDtypeStruct((n, n), out_dtype),
        compiler_params=pltpu.CompilerParams(
            dimension_semantics=("parallel", "parallel"),
            vmem_limit_bytes=48 * 1024 * 1024,   # fits v7x (64 MiB) with headroom
        ),
    )(zp, zp)
    return adj


# ----------------------------------------------------------------------------
if __name__ == "__main__":
    key = jax.random.PRNGKey(0)

    def _check(n, d):
        z = jax.random.normal(jax.random.fold_in(key, n), (n, d), jnp.float32)
        adj = inner_product_decoder(z, dropout=0.0, training=False)
        jax.block_until_ready(adj)
        assert adj.shape == (n, n)
        # Reference with the same bf16 operand quantization the kernel applies.
        zq = z.astype(jnp.bfloat16).astype(jnp.float32)
        ref = jax.nn.sigmoid(zq @ zq.T)
        max_err = float(jnp.max(jnp.abs(adj - ref)))
        assert max_err < 1e-2, f"max abs error {max_err} (N={n}, D={d})"

    _check(256, 32)   # tile-aligned
    _check(200, 32)   # non-aligned N: exercises masked edge stores (no slice)

    print("KERNEL_OK")
</pallas_src>

<mosaic_0001>
module attributes {stable_mosaic.version = 11 : i64} {
  func.func @_inner_product_decoder_kernel(%arg0: i32, %arg1: i32, %arg2: memref<128x128xbf16, #tpu.memory_space<vmem>>, %arg3: memref<128x128xbf16, #tpu.memory_space<vmem>>, %arg4: memref<128x128xf32, #tpu.memory_space<vmem>>) attributes {dimension_semantics = [#tpu.dimension_semantics<parallel>, #tpu.dimension_semantics<parallel>], iteration_bounds = array<i64: 2, 2>, scalar_prefetch = 0 : i64, scratch_operands = 0 : i64, tpu.core_type = #tpu.core_type<tc>, window_params = [{transform_indices = @transform_0, window_bounds = array<i64: 128, 128>}, {transform_indices = @transform_1, window_bounds = array<i64: 128, 128>}, {transform_indices = @transform_2, window_bounds = array<i64: 128, 128>}]} {
    %c0 = arith.constant 0 : index
    %c0_0 = arith.constant 0 : index
    %0 = vector.load %arg2[%c0, %c0_0] : memref<128x128xbf16, #tpu.memory_space<vmem>>, vector<128x128xbf16>
    %c0_1 = arith.constant 0 : index
    %c0_2 = arith.constant 0 : index
    %1 = vector.load %arg3[%c0_1, %c0_2] : memref<128x128xbf16, #tpu.memory_space<vmem>>, vector<128x128xbf16>
    %cst = arith.constant dense<0.000000e+00> : vector<128x128xf32>
    %2 = tpu.matmul %0, %1, %cst {dimension_numbers = #tpu.dot_dimension_numbers<[1], [1], [0], [0], [0, 0, 1, 0], [], []>} : vector<128x128xbf16>, vector<128x128xbf16>, vector<128x128xf32> -> vector<128x128xf32>
    %cst_3 = arith.constant 5.000000e-01 : f32
    %3 = vector.broadcast %cst_3 : f32 to vector<128x128xf32>
    %4 = arith.mulf %3, %2 : vector<128x128xf32>
    %5 = math.tanh %4 : vector<128x128xf32>
    %cst_4 = arith.constant 5.000000e-01 : f32
    %6 = vector.broadcast %cst_4 : f32 to vector<128x128xf32>
    %7 = arith.mulf %6, %5 : vector<128x128xf32>
    %cst_5 = arith.constant 5.000000e-01 : f32
    %8 = vector.broadcast %cst_5 : f32 to vector<128x128xf32>
    %9 = arith.addf %7, %8 : vector<128x128xf32>
    %c0_6 = arith.constant 0 : index
    %c0_7 = arith.constant 0 : index
    %10 = vector.load %arg4[%c0_6, %c0_7] : memref<128x128xf32, #tpu.memory_space<vmem>>, vector<128x128xf32>
    tpu.vector_store %arg4[%c0_6, %c0_7], %9 {strides = array<i32>} : memref<128x128xf32, #tpu.memory_space<vmem>>, vector<128x128xf32>,
    return
  }
  func.func @transform_0(%arg0: i32, %arg1: i32) -> (i32, i32) {
    %c0_i32 = arith.constant 0 : i32
    %c0_i32_0 = arith.constant 0 : i32
    return %arg0, %c0_i32 : i32, i32
  }
  func.func @transform_1(%arg0: i32, %arg1: i32) -> (i32, i32) {
    %c0_i32 = arith.constant 0 : i32
    %c0_i32_0 = arith.constant 0 : i32
    return %arg1, %c0_i32 : i32, i32
  }
  func.func @transform_2(%arg0: i32, %arg1: i32) -> (i32, i32) {
    %c0_i32 = arith.constant 0 : i32
    return %arg0, %arg1 : i32, i32
  }
}

</mosaic_0001>

<bundles_post_ra>
// kernel: tpu_custom_call.1
= control target key start
LH: loop header
LB: loop body
LE: loop exit
PB: predicated region body
PF: predicated region fallthrough
CT: control target
= control target key end

     0   :  { %s1562_s0 = inlined_call_operand.hbm [shape: bf16[256,128], index: 0, kind: input, shape index: {}]   ;;  %s1563_s1 = inlined_call_operand.hbm [shape: bf16[256,128], index: 1, kind: input, shape index: {}]   ;;  %s1564_s2 = inlined_call_operand.hbm [shape: f32[256,256], index: 2, kind: output, shape index: {}]  }
   0x1   :  { %1576 = sst [smem:[#allocation15_spill]] %s1562_s0 }
   0x2   :  { %7 = vsyncpa [#allocation3], 0 }
   0x3   :  { %9 = vsyncpa [#allocation3 + $0x1], 0 }
   0x4   :  { %10 = vsyncpa [#allocation6], 0 }
   0x5   :  { %12 = vsyncpa [#allocation6 + $0x1], 0 }
   0x6   :  { %13 = vsyncpa [#allocation4], 0 }
   0x7   :  { %15 = vsyncpa [#allocation4 + $0x1], 0  ;;  %s1172_s9 = smov 0   ;;  %s1174_s10 = smov 0  }
   0x8   :  { %s1176_s11 = smov 0   ;;  %s1178_s12 = smov 0  }
   0x9   :  { %s1180_s13 = smov 0   ;;  %s1182_s14 = smov 0  }
   0xa   :  { %s1184_s15 = smov 0   ;;  %s1186_s16 = smov 0  }
   0xb   :  { %s1188_s17 = smov 0   ;;  %s1190_s18 = smov 0  }
   0xc   :  { %s1192_s19 = smov 0   ;;  %s1194_s20 = smov 0  }
   0xd   :  { %s1196_s21 = smov 0   ;;  %s1198_s22 = smov 0  }
   0xe LB: > { %1577 = sst [smem:[#allocation11_spill]] %s1139_s20  ;;  %s650_s23 = sadd.s32 4294967295, %s1147_s22   ;;  %s1147_s22 = sphi %s1198_s22, %s21_s22   ;;  %s1143_s21 = sphi %s1196_s21, %s1604_s21   ;;  %s1139_s20 = sphi %s1194_s20, %s1615_s20   ;;  %s1135_s19 = sphi %s1192_s19, %s1602_s19   ;;  %s1131_s18 = sphi %s1190_s18, %s1601_s18   ;;  %s1127_s17 = sphi %s1188_s17, %s1614_s17   ;;  %s1123_s16 = sphi %s1186_s16, %s1613_s16   ;;  %s1119_s15 = sphi %s1184_s15, %s1612_s15   ;;  %s1115_s14 = sphi %s1182_s14, %s1611_s14   ;;  %s1111_s13 = sphi %s1180_s13, %s1610_s13   ;;  %s1107_s12 = sphi %s1178_s12, %s1609_s12   ;;  %s1103_s11 = sphi %s1176_s11, %s1608_s11   ;;  %s1099_s10 = sphi %s1174_s10, %s1607_s10   ;;  %s1095_s9 = sphi %s1172_s9, %s1606_s9  }
   0xf   : > { %1578 = sst [smem:[#allocation12_spill]] %s1143_s21  ;;  %s33_s24 = sadd.s32 1, %s1143_s21 }
  0x10   : > { %p47_p0 = scmp.ne.s32.totalorder %s1127_s17, %s1123_s16  ;;  %p1566_p1 = scmp.eq.s32.totalorder %s1147_s22, 0 }
  0x11   : > { %p53_p2 = scmp.ne.s32.totalorder %s1123_s16, %s1119_s15  ;;  %p1249_p3 = scmp.eq.s32.totalorder %s650_s23, 0 }
  0x12   : > { %p49_p4 = por %p1566_p1, %p47_p0  ;;  %p1565_p6 = scmp.lt.s32.totalorder %s1147_s22, 4 }
  0x13   : > { %p1257_p5 = por %p1249_p3, %p53_p2  ;;  %s131_s28 = sand.u32 1, %s1127_s17  }
  0x14   : > { %s686_s29 = sshll.u32 %s1143_s21, 10  ;;  %s654_s30 = sshll.u32 %s131_s28, 6 }
  0x15   : > { %s1580_s27 = scalar_select %p1257_p5, 1, 0 }
  0x16   : > { %s1581_s0 = sld [smem:[#allocation15_spill]]  ;;  %s135_s6 = scalar_lea.vmem [#allocation2], %s654_s30 }
  0x17   : > { %s142_s7 = sshll.u32 %s135_s6, 4  ;;  %p1271_p7 = pnand %p1565_p6, %p49_p4  ;;  %s1275_s7 = int_to_ptr.vmem [resolvable:$true] %s142_s7 }
  0x18   : > { %s1277_s15 = scalar_lea.sflag [#allocation3], %s131_s28 }
  0x19   : > { %p939_p9 = pneg %p1271_p7 }
  0x1c   : > { %s1267_s5 = scalar_lea.hbm %s1581_s0, %s686_s29  ;;  %s942_s4 = scalar_lea.hbm %s1581_s0, 2048 }
  0x1d   : > { %s937_s3 = scalar_lea.hbm %s1267_s5, 1024  ;;  %p943_p12 = scmp.lt.u32.totalorder %s1267_s5, %s1581_s0 }
  0x1e   : > { %p938_p8 = scmp.ne.s32.totalorder %s1267_s5, %s937_s3  ;;  %p944_p13 = scmp.lt.u32.totalorder %s942_s4, %s937_s3 }
  0x1f   : > { %p946_p2 = scmp.lt.u32.totalorder %s937_s3, %s1267_s5 }
  0x20   : > { %p940_p10 = pnand %p939_p9, %p938_p8  ;;  %p945_p0 = por %p944_p13, %p943_p12 }
  0x22   : > { %p941_p11 = pneg %p940_p10  ;;  %p947_p4 = por %p946_p2, %p945_p0 }
  0x24   : > { %p948_p6 = pnand %p947_p4, %p941_p11 }
  0x26   : > { %951 = shalt.err (!%p948_p6)
}
  0x27   : > { %s952_s28 = scalar_lea.vmem %s1275_s7, 1024  ;;  %s1149_s29 = smov [#allocation2]  }
  0x28   : > { %p953_p8 = scmp.ne.s32.totalorder %s1275_s7, %s952_s28  ;;  %s957_s30 = sshll.u32 %s1149_s29, 4  ;;  %s958_s30 = int_to_ptr.vmem [resolvable:$false] %s957_s30 }
  0x29   : > { %s959_s25 = scalar_lea.vmem %s958_s30, 2048  ;;  %p960_p5 = scmp.lt.s32.totalorder %s1275_s7, %s958_s30 }
  0x2a   : > { %p955_p10 = pnand %p953_p8, %p939_p9  ;;  %p961_p12 = scmp.lt.s32.totalorder %s959_s25, %s952_s28 }
  0x2c   : > { %p956_p1 = pneg %p955_p10  ;;  %p962_p13 = por %p961_p12, %p960_p5 }
  0x2e   : > { %p963_p0 = pnand %p962_p13, %p956_p1 }
  0x30   : > { %966 = shalt.err (!%p963_p0)
}
  0x31   : > { %s1568_s3 = smov 64   ;;  %s1569_s4 = smov 4  }
  0x32   : > { %762 = dma.hbm_to_vmem [thread:$0]  (!%p1271_p7), %s1267_s5, 1024, %s1275_s7, %s1277_s15, %s1568_s3, %s1568_s3, %s1569_s4  }
  0x33   : > { %p660_p1 = scmp.ge.s32.totalorder %s1147_s22, 1  ;;  %p171_p5 = scmp.lt.s32.totalorder %s1147_s22, 5 }
  0x34   : > { %p1312_p6 = scmp.eq.s32.totalorder %s650_s23, 3  ;;  %s651_s8 = sadd.s32 4294967294, %s1147_s22  }
  0x35   : > { %p1316_p9 = pnand %p660_p1, %p171_p5  ;;  %s30_s29 = sadd.s32 1, %s1139_s20 }
  0x36   : > { %p31_p7 = scmp.ge.s32.totalorder %s30_s29, 2  ;;  %s66_s5 = sadd.s32 1, %s1115_s14 }
  0x37   : > { %p73_p11 = scmp.ne.s32.totalorder %s1115_s14, %s1111_s13  ;;  %p79_p2 = scmp.ne.s32.totalorder %s1111_s13, %s1107_s12 }
  0x38   : > { %s1617_s29 = smov (%p31_p7, %s30_s29), 0  ;;  %s1619_s24 = smov (!%p31_p7, %s33_s24), %s1143_s21 }
  0x39   : > { %1585 = sst [smem:[#allocation13_spill]] %s1617_s29  ;;  %s63_s23 = ssub.s32 %s1139_s20, %s1617_s29 }
  0x3a   : > { %s94_s7 = sadd.s32 1, %s1103_s11  ;;  %p35_p4 = scmp.ge.s32.totalorder %s1619_s24, 2 }
  0x3b   : > { %p64_p8 = scmp.eq.s32.totalorder %s63_s23, 0  ;;  %p1337_p10 = por %p79_p2, %p1249_p3 }
  0x3c   : > { %p104_p12 = scmp.ne.s32.totalorder %s1103_s11, %s1099_s10  ;;  %s1621_s24 = smov (%p35_p4, %s1619_s24), 0 }
  0x3d   : > { %s1586_s12 = scalar_select %p1337_p10, 1, 0 }
  0x3e   : > { %1587 = sst [smem:[#allocation14_spill]] %s1621_s24  ;;  %s37_s30 = ssub.s32 %s1143_s21, %s1621_s24 }
  0x3f   : > { %s1346_s15 = scalar_select %p64_p8, %s1115_s14, %s66_s5  }
  0x40   : > { %p1352_p13 = por %p1312_p6, %p104_p12  ;;  %p38_p0 = scmp.eq.s32.totalorder %s37_s30, 0 }
  0x41   : > { %s91_s26 = sor.u32 %s63_s23, %s37_s30  ;;  %p110_p1 = scmp.ne.s32.totalorder %s1099_s10, %s1095_s9 }
  0x42   : > { %s1588_s25 = scalar_select %p1352_p13, 1, 0 }
  0x43   : > { %p92_p3 = scmp.eq.s32.totalorder %s91_s26, 0  ;;  %s1589_s3 = sadd.s32 1, %s1127_s17 }
  0x44   : > { %s1361_s4 = scalar_select %p38_p0, %s1127_s17, %s1589_s3  }
  0x45   : > { %s1364_s0 = scalar_select %p92_p3, %s1103_s11, %s94_s7  }
  0x46   : > { %p111_p5 = scmp.eq.s32.totalorder %s651_s8, 3  ;;  %s152_s29 = sand.u32 1, %s1115_s14  }
  0x47   : > { %p1590_p7 = scmp.eq.s32.totalorder %s1147_s22, 0  ;;  %s657_s6 = sshll.u32 %s152_s29, 6 }
  0x48   : > { %p1372_p6 = por %p111_p5, %p110_p1  ;;  %s687_s24 = sshll.u32 %s1139_s20, 10 }
  0x49   : > { %p75_p2 = por %p73_p11, %p1590_p7  ;;  %s156_s21 = scalar_lea.vmem [#allocation5], %s657_s6 }
  0x4a   : > { %s1591_s5 = scalar_select %p1372_p6, 1, 0 }
  0x4b   : > { %s163_s23 = sshll.u32 %s156_s21, 4  ;;  %s1380_s3 = scalar_lea.hbm %s1563_s1, %s687_s24  ;;  %s1382_s23 = int_to_ptr.vmem [resolvable:$true] %s163_s23 }
  0x4c   : > { %p1592_p11 = scmp.lt.s32.totalorder %s1147_s22, 4  ;;  %s1390_s7 = scalar_lea.sflag [#allocation6], %s152_s29 }
  0x4d   : > { %s967_s21 = scalar_lea.hbm %s1380_s3, 1024  ;;  %s972_s30 = scalar_lea.hbm %s1563_s1, 2048 }
  0x4e   : > { %p1386_p4 = pnand %p1592_p11, %p75_p2  ;;  %p968_p8 = scmp.ne.s32.totalorder %s1380_s3, %s967_s21 }
  0x4f   : > { %p973_p1 = scmp.lt.u32.totalorder %s1380_s3, %s1563_s1  ;;  %p974_p5 = scmp.lt.u32.totalorder %s972_s30, %s967_s21 }
  0x50   : > { %p969_p12 = pneg %p1386_p4  ;;  %p976_p2 = scmp.lt.u32.totalorder %s967_s21, %s1380_s3 }
  0x51   : > { %p975_p7 = por %p974_p5, %p973_p1 }
  0x52   : > { %p970_p0 = pnand %p969_p12, %p968_p8 }
  0x53   : > { %p977_p11 = por %p976_p2, %p975_p7 }
  0x54   : > { %p971_p3 = pneg %p970_p0 }
  0x56   : > { %p978_p6 = pnand %p977_p11, %p971_p3 }
  0x58   : > { %981 = shalt.err (!%p978_p6)
}
  0x59   : > { %s982_s29 = scalar_lea.vmem %s1382_s23, 1024  ;;  %s1152_s24 = smov [#allocation5]  }
  0x5a   : > { %p983_p8 = scmp.ne.s32.totalorder %s1382_s23, %s982_s29  ;;  %s987_s6 = sshll.u32 %s1152_s24, 4  ;;  %s988_s6 = int_to_ptr.vmem [resolvable:$false] %s987_s6 }
  0x5b   : > { %s989_s20 = scalar_lea.vmem %s988_s6, 2048  ;;  %p990_p10 = scmp.lt.s32.totalorder %s1382_s23, %s988_s6 }
  0x5c   : > { %p985_p0 = pnand %p983_p8, %p969_p12  ;;  %p991_p1 = scmp.lt.s32.totalorder %s989_s20, %s982_s29 }
  0x5e   : > { %p986_p13 = pneg %p985_p0  ;;  %p992_p5 = por %p991_p1, %p990_p10 }
  0x60   : > { %p993_p7 = pnand %p992_p5, %p986_p13 }
  0x62   : > { %996 = shalt.err (!%p993_p7)
}
  0x63   : > { %s1594_s21 = smov 4   ;;  %s1595_s30 = smov 64  }
  0x64   : > { %765 = dma.hbm_to_vmem [thread:$0]  (!%p1386_p4), %s1380_s3, 1024, %s1382_s23, %s1390_s7, %s1595_s30, %s1595_s30, %s1594_s21  }
  0x65   : > { %175 = sbr.rel (%p1316_p9) target bundleno = 438 (0x1b6), region = 28  ;;  %s177_s26 = sand.u32 (!%p1316_p9), 1, %s1123_s16  }
  0x66   : > { %s661_s24 = sshll.u32 (!%p1316_p9), %s177_s26, 6  ;;  %s178_s29 = scalar_lea.sflag (!%p1316_p9), [#allocation3], %s177_s26 }
  0x67   : > { %s1424_s6 = scalar_lea.vmem (!%p1316_p9), [#allocation2], %s661_s24  ;;  %p1596_p10 = scmp.ne.s32.totalorder (!%p1316_p9), %s1580_s27, 0 }
  0x6c   : > { %1082 = dma.done.wait (%p1596_p10), %s178_s29, 1024  }
  0x6d   : > { %1084 = vsyncadd (%p1596_p10), %s178_s29, 4294966272  ;;  %s186_s8 = sand.u32 1, %s1111_s13   ;;  %p1597_p9 = scmp.ne.s32.totalorder %s1586_s12, 0 }
  0x6e   : > { %s662_s20 = sshll.u32 %s186_s8, 6  ;;  %s187_s23 = scalar_lea.sflag [#allocation6], %s186_s8 }
  0x6f   : > { %s1431_s3 = scalar_lea.vmem [#allocation5], %s662_s20 }
  0x70   : > { %1086 = dma.done.wait (%p1597_p9), %s187_s23, 1024  }
  0x71   : > { %1088 = vsyncadd (%p1597_p9), %s187_s23, 4294966272  ;;  %v889_v0 = vld [vmem:[%s1431_s3] sm:$0xff]   ;;  %v890_v1 = vld [vmem:[%s1431_s3 + $0x8] sm:$0xff]   ;;  %s213_s27 = sand.u32 1, %s1099_s10   ;;  %s688_s7 = sshll.u32 %s1135_s19, 5 }
  0x72   : > { %705 = vmatprep.subr.bf16.mxu0 %v889_v0  ;;  %737 = vmatprep.subr.bf16.mxu1 %v889_v0  ;;  %v891_v2 = vld [vmem:[%s1431_s3 + $0x10] sm:$0xff]   ;;  %v897_v3 = vld [vmem:[%s1424_s6] sm:$0xff]   ;;  %v892_v5 = vld [vmem:[%s1431_s3 + $0x18] sm:$0xff]   ;;  %s663_s28 = sshll.u32 %s213_s27, 7  ;;  %s538_s21 = sadd.s32 %s1131_s18, %s688_s7 }
  0x73   : > { %706 = vmatpush3.bf16.xpose.msra.mxu0 %v889_v0  ;;  %745 = vmatpush3.bf16.xpose.msra.mxu1 %v889_v0  ;;  %v898_v4 = vld [vmem:[%s1424_s6 + $0x20] sm:$0xff]   ;;  %v894_v7 = vld [vmem:[%s1431_s3 + $0x28] sm:$0xff]   ;;  %v895_v8 = vld [vmem:[%s1431_s3 + $0x30] sm:$0xff]   ;;  %s1456_s12 = scalar_lea.vmem [#allocation7], %s663_s28  ;;  %s683_s19 = sshll.u32 %s538_s21, 7 }
  0x74   : > { %707 = vmatprep.subr.bf16.mxu0 %v890_v1  ;;  %738 = vmatprep.subr.bf16.mxu1 %v890_v1  ;;  %v893_v6 = vld [vmem:[%s1431_s3 + $0x20] sm:$0xff]   ;;  %v896_v9 = vld [vmem:[%s1431_s3 + $0x38] sm:$0xff]   ;;  %v899_v10 = vld [vmem:[%s1424_s6 + $0x8] sm:$0xff]   ;;  %s541_s18 = sshll.u32 %s1456_s12, 4  ;;  %s1476_s24 = scalar_lea.hbm %s1564_s2, %s683_s19  ;;  %s1479_s18 = int_to_ptr.vmem [resolvable:$true] %s541_s18 }
  0x75   : > { %721 = vmatprep.mubr.bf16.mxu0 %v897_v3  ;;  %729 = vmatprep.mubr.bf16.mxu1 %v898_v4  ;;  %v900_v11 = vld [vmem:[%s1424_s6 + $0x28] sm:$0xff]   ;;  %v901_v12 = vld [vmem:[%s1424_s6 + $0x10] sm:$0xff]   ;;  %v903_v14 = vld [vmem:[%s1424_s6 + $0x18] sm:$0xff]   ;;  %s1486_s29 = scalar_lea.sflag [#allocation4], %s213_s27  ;;  %p1598_p6 = scmp.ne.s32.totalorder %s1588_s25, 0 }
  0x76   : > { %v902_v13 = vld [vmem:[%s1424_s6 + $0x30] sm:$0xff]   ;;  %v904_v15 = vld [vmem:[%s1424_s6 + $0x38] sm:$0xff]   ;;  %s997_s6 = scalar_lea.vmem %s1479_s18, 2048  ;;  %s1153_s8 = smov [#allocation7]  }
  0x77   : > { %p998_p13 = scmp.ne.s32.totalorder %s1479_s18, %s997_s6  ;;  %s1001_s20 = sshll.u32 %s1153_s8, 4  ;;  %s1002_s20 = int_to_ptr.vmem [resolvable:$false] %s1001_s20 }
  0x78   : > { %s1003_s23 = scalar_lea.vmem %s1002_s20, 4096  ;;  %p1004_p3 = scmp.lt.s32.totalorder %s1479_s18, %s1002_s20 }
  0x79   : > { %p999_p4 = pnand %p998_p13, %p1598_p6  ;;  %p1005_p2 = scmp.lt.s32.totalorder %s1003_s23, %s997_s6 }
  0x7b   : > { %708 = vmatpush3.bf16.xpose.msra.mxu0 %v890_v1  ;;  %746 = vmatpush3.bf16.xpose.msra.mxu1 %v890_v1  ;;  %p1000_p12 = pneg %p999_p4  ;;  %p1006_p11 = por %p1005_p2, %p1004_p3 }
  0x7c   : > { %709 = vmatprep.subr.bf16.mxu0 %v891_v2  ;;  %739 = vmatprep.subr.bf16.mxu1 %v891_v2 }
  0x7d   : > { %p1007_p8 = pnand %p1006_p11, %p1000_p12 }
  0x83   : > { %710 = vmatpush3.bf16.xpose.msra.mxu0 %v891_v2  ;;  %747 = vmatpush3.bf16.xpose.msra.mxu1 %v891_v2 }
  0x84   : > { %711 = vmatprep.subr.bf16.mxu0 %v892_v5  ;;  %740 = vmatprep.subr.bf16.mxu1 %v892_v5 }
  0x8b   : > { %712 = vmatpush3.bf16.xpose.msra.mxu0 %v892_v5  ;;  %748 = vmatpush3.bf16.xpose.msra.mxu1 %v892_v5 }
  0x8c   : > { %713 = vmatprep.subr.bf16.mxu0 %v893_v6  ;;  %741 = vmatprep.subr.bf16.mxu1 %v893_v6 }
  0x93   : > { %714 = vmatpush3.bf16.xpose.msra.mxu0 %v893_v6  ;;  %749 = vmatpush3.bf16.xpose.msra.mxu1 %v893_v6 }
  0x94   : > { %715 = vmatprep.subr.bf16.mxu0 %v894_v7  ;;  %742 = vmatprep.subr.bf16.mxu1 %v894_v7 }
  0x9b   : > { %716 = vmatpush3.bf16.xpose.msra.mxu0 %v894_v7  ;;  %750 = vmatpush3.bf16.xpose.msra.mxu1 %v894_v7 }
  0x9c   : > { %717 = vmatprep.subr.bf16.mxu0 %v895_v8  ;;  %743 = vmatprep.subr.bf16.mxu1 %v895_v8 }
  0xa3   : > { %718 = vmatpush3.bf16.xpose.msra.mxu0 %v895_v8  ;;  %751 = vmatpush3.bf16.xpose.msra.mxu1 %v895_v8 }
  0xa4   : > { %719 = vmatprep.subr.bf16.mxu0 %v896_v9  ;;  %744 = vmatprep.subr.bf16.mxu1 %v896_v9 }
  0xab   : > { %720 = vmatpush3.bf16.xpose.msra.mxu0 %v896_v9  ;;  %752 = vmatpush3.bf16.xpose.msra.mxu1 %v896_v9 }
  0xb2   : > { %722 = vmatmul.mubr.bf16.vlgmr.msra.gmra.mrb[0].mxu0 %v899_v10  ;;  %730 = vmatmul.mubr.bf16.vlgmr.msra.gmra.mrb[0].mxu1 %v900_v11 }
  0xb3   : > { %725 = vmatprep.mubr.bf16.mxu0 %v901_v12  ;;  %733 = vmatprep.mubr.bf16.mxu1 %v902_v13 }
  0xba   : > { %726 = vmatmul.mubr.bf16.gmra.mrb[4].mxu0 %v903_v14  ;;  %734 = vmatmul.mubr.bf16.gmra.mrb[4].mxu1 %v904_v15 }
 0x185   : > { %v723_v16 = vpop.f32.mrb[0].mxu0  ;;  %v731_v17 = vpop.f32.mrb[0].mxu1 }
 0x186   : > { %v447_v18 = vmul.f32 0.5, %v723_v16  ;;  %v455_v19 = vmul.f32 0.5, %v731_v17  ;;  %v382_v20 = vpop.f32.mrb[1].mxu0  ;;  %v414_v21 = vpop.f32.mrb[1].mxu1 }
 0x187   : > { %v445_v22 = vmul.f32 0.5, %v382_v20  ;;  %v453_v23 = vmul.f32 0.5, %v414_v21  ;;  %v724_v24 = vpop.f32.mrb[2].mxu0  ;;  %v732_v25 = vpop.f32.mrb[2].mxu1 }
 0x188   : > { %905 = vtanh.f32 %v447_v18  ;;  %v448_v26 = vmul.f32 0.5, %v724_v24  ;;  %v385_v27 = vpop.f32.mrb[3].mxu0  ;;  %v417_v28 = vpop.f32.mrb[3].mxu1  ;;  %v456_v29 = vmul.f32 0.5, %v732_v25 }
 0x189   : > { %907 = vtanh.f32 %v455_v19  ;;  %v446_v30 = vmul.f32 0.5, %v385_v27  ;;  %v454_v31 = vmul.f32 0.5, %v417_v28 }
 0x18a   : > { %909 = vtanh.f32 %v445_v22 }
 0x18b   : > { %911 = vtanh.f32 %v453_v23 }
 0x18c   : > { %913 = vtanh.f32 %v448_v26 }
 0x18d   : > { %915 = vtanh.f32 %v456_v29  ;;  %v727_v32 = vpop.f32.mrb[4].mxu0  ;;  %v735_v33 = vpop.f32.mrb[4].mxu1 }
 0x18e   : > { %917 = vtanh.f32 %v446_v30  ;;  %v451_v34 = vmul.f32 0.5, %v727_v32  ;;  %v459_v35 = vmul.f32 0.5, %v735_v33  ;;  %v398_v36 = vpop.f32.mrb[5].mxu0  ;;  %v430_v37 = vpop.f32.mrb[5].mxu1 }
 0x18f   : > { %919 = vtanh.f32 %v454_v31  ;;  %v449_v38 = vmul.f32 0.5, %v398_v36  ;;  %v457_v39 = vmul.f32 0.5, %v430_v37  ;;  %v728_v40 = vpop.f32.mrb[6].mxu0  ;;  %v736_v41 = vpop.f32.mrb[6].mxu1 }
 0x190   : > { %921 = vtanh.f32 %v451_v34  ;;  %v452_v42 = vmul.f32 0.5, %v728_v40  ;;  %v401_v43 = vpop.f32.mrb[7].mxu0  ;;  %v433_v44 = vpop.f32.mrb[7].mxu1  ;;  %v460_v45 = vmul.f32 0.5, %v736_v41 }
 0x191   : > { %923 = vtanh.f32 %v459_v35  ;;  %v450_v47 = vmul.f32 0.5, %v401_v43  ;;  %v458_v50 = vmul.f32 0.5, %v433_v44 }
 0x192   : > { %v906_v46 = vpop.eup %905  ;;  %925 = vtanh.f32 %v449_v38 }
 0x193   : > { %v908_v48 = vpop.eup %907  ;;  %v479_v49 = vmul.f32 0.5, %v906_v46  ;;  %927 = vtanh.f32 %v457_v39 }
 0x194   : > { %v910_v51 = vpop.eup %909  ;;  %v487_v52 = vmul.f32 0.5, %v908_v48  ;;  %929 = vtanh.f32 %v452_v42 }
 0x195   : > { %v912_v53 = vpop.eup %911  ;;  %v495_v54 = vadd.f32 0.5, %v479_v49  ;;  %v477_v55 = vmul.f32 0.5, %v910_v51  ;;  %931 = vtanh.f32 %v460_v45 }
 0x196   : > { %v914_v56 = vpop.eup %913  ;;  %v503_v57 = vadd.f32 0.5, %v487_v52  ;;  %v485_v58 = vmul.f32 0.5, %v912_v53  ;;  %933 = vtanh.f32 %v450_v47 }
 0x197   : > { %v916_v59 = vpop.eup %915  ;;  %511 = vst [vmem:[%s1456_s12 + $0x10] sm:$0xff] %v495_v54  ;;  %v493_v60 = vadd.f32 0.5, %v477_v55  ;;  %v480_v61 = vmul.f32 0.5, %v914_v56  ;;  %935 = vtanh.f32 %v458_v50 }
 0x198   : > { %v918_v62 = vpop.eup %917  ;;  %519 = vst [vmem:[%s1456_s12 + $0x50] sm:$0xff] %v503_v57  ;;  %v501_v63 = vadd.f32 0.5, %v485_v58  ;;  %v488_v0 = vmul.f32 0.5, %v916_v59 }
 0x199   : > { %v920_v1 = vpop.eup %919  ;;  %509 = vst [vmem:[%s1456_s12] sm:$0xff] %v493_v60  ;;  %v496_v2 = vadd.f32 0.5, %v480_v61  ;;  %v478_v3 = vmul.f32 0.5, %v918_v62 }
 0x19a   : > { %v922_v4 = vpop.eup %921  ;;  %517 = vst [vmem:[%s1456_s12 + $0x40] sm:$0xff] %v501_v63  ;;  %v504_v5 = vadd.f32 0.5, %v488_v0  ;;  %v486_v6 = vmul.f32 0.5, %v920_v1 }
 0x19b   : > { %v924_v7 = vpop.eup %923  ;;  %512 = vst [vmem:[%s1456_s12 + $0x18] sm:$0xff] %v496_v2  ;;  %v494_v8 = vadd.f32 0.5, %v478_v3  ;;  %v483_v9 = vmul.f32 0.5, %v922_v4 }
 0x19c   : > { %v926_v10 = vpop.eup %925  ;;  %520 = vst [vmem:[%s1456_s12 + $0x58] sm:$0xff] %v504_v5  ;;  %v502_v11 = vadd.f32 0.5, %v486_v6  ;;  %v491_v12 = vmul.f32 0.5, %v924_v7 }
 0x19d   : > { %v928_v13 = vpop.eup %927  ;;  %510 = vst [vmem:[%s1456_s12 + $0x8] sm:$0xff] %v494_v8  ;;  %v499_v14 = vadd.f32 0.5, %v483_v9  ;;  %v481_v15 = vmul.f32 0.5, %v926_v10 }
 0x19e   : > { %v930_v16 = vpop.eup %929  ;;  %518 = vst [vmem:[%s1456_s12 + $0x48] sm:$0xff] %v502_v11  ;;  %v507_v17 = vadd.f32 0.5, %v491_v12  ;;  %v489_v18 = vmul.f32 0.5, %v928_v13 }
 0x19f   : > { %v932_v19 = vpop.eup %931  ;;  %515 = vst [vmem:[%s1456_s12 + $0x30] sm:$0xff] %v499_v14  ;;  %v497_v20 = vadd.f32 0.5, %v481_v15  ;;  %v484_v21 = vmul.f32 0.5, %v930_v16 }
 0x1a0   : > { %v934_v22 = vpop.eup %933  ;;  %523 = vst [vmem:[%s1456_s12 + $0x70] sm:$0xff] %v507_v17  ;;  %v505_v23 = vadd.f32 0.5, %v489_v18  ;;  %v492_v24 = vmul.f32 0.5, %v932_v19 }
 0x1a1   : > { %v936_v25 = vpop.eup %935  ;;  %513 = vst [vmem:[%s1456_s12 + $0x20] sm:$0xff] %v497_v20  ;;  %v500_v26 = vadd.f32 0.5, %v484_v21  ;;  %v482_v27 = vmul.f32 0.5, %v934_v22 }
 0x1a2   : > { %521 = vst [vmem:[%s1456_s12 + $0x60] sm:$0xff] %v505_v23  ;;  %v508_v28 = vadd.f32 0.5, %v492_v24  ;;  %v490_v29 = vmul.f32 0.5, %v936_v25 }
 0x1a3   : > { %516 = vst [vmem:[%s1456_s12 + $0x38] sm:$0xff] %v500_v26  ;;  %v498_v30 = vadd.f32 0.5, %v482_v27 }
 0x1a4   : > { %524 = vst [vmem:[%s1456_s12 + $0x78] sm:$0xff] %v508_v28  ;;  %v506_v31 = vadd.f32 0.5, %v490_v29 }
 0x1a5   : > { %514 = vst [vmem:[%s1456_s12 + $0x28] sm:$0xff] %v498_v30 }
 0x1a6   : > { %522 = vst [vmem:[%s1456_s12 + $0x68] sm:$0xff] %v506_v31 }
 0x1a7   : > { %1010 = shalt.err (!%p1007_p8)
}
 0x1a8   : > { %s1011_s3 = scalar_lea.hbm %s1476_s24, 2048  ;;  %s1015_s12 = scalar_lea.hbm %s1564_s2, 8192 }
 0x1a9   : > { %p1012_p0 = scmp.ne.s32.totalorder %s1476_s24, %s1011_s3  ;;  %p1016_p7 = scmp.lt.u32.totalorder %s1476_s24, %s1564_s2 }
 0x1aa   : > { %p1017_p10 = scmp.lt.u32.totalorder %s1015_s12, %s1011_s3  ;;  %p1019_p13 = scmp.lt.u32.totalorder %s1011_s3, %s1476_s24 }
 0x1ab   : > { %p1013_p1 = pnand %p1012_p0, %p1598_p6 }
 0x1ac   : > { %p1018_p9 = por %p1017_p10, %p1016_p7 }
 0x1ad   : > { %p1014_p5 = pneg %p1013_p1 }
 0x1ae   : > { %p1020_p4 = por %p1019_p13, %p1018_p9 }
 0x1b0   : > { %p1021_p12 = pnand %p1020_p4, %p1014_p5 }
 0x1b2   : > { %1024 = shalt.err (!%p1021_p12)
}
 0x1b3   : > { %s1154_s19 = smov 128   ;;  %s1155_s30 = smov 256  }
 0x1b4   : > { %s1156_s26 = smov 8  }
 0x1b5   : > { %757 = dma.vmem_to_hbm [thread:$0]  (%p1598_p6), %s1479_s18, 2048, %s1476_s24, %s1486_s29, %s1154_s19, %s1155_s30, %s1156_s26  }
 0x1b6 PF: > { %p771_p3 = scmp.ge.s32.totalorder %s1147_s22, 2  ;;  %s556_s6 = sand.u32 1, %s1095_s9  }
 0x1b7   : > { %p1599_p2 = scmp.ne.s32.totalorder %s1591_s5, 0  ;;  %s557_s8 = scalar_lea.sflag [#allocation4], %s556_s6 }
 0x1b9   : > { %p767_p11 = pnand %p771_p3, %p1599_p2 }
 0x1bb   : > { %1090 = dma.done.wait (!%p767_p11), %s557_s8, 2048  }
 0x1bc   : > { %1092 = vsyncadd (!%p767_p11), %s557_s8, 4294965248  ;;  %s21_s22 = sadd.s32 1, %s1147_s22   ;;  %s1601_s18 = sld [smem:[#allocation11_spill]] }
 0x1bd   : > { %p1515_p8 = scmp.ge.s32.totalorder %s21_s22, 6   ;;  %s1602_s19 = sld [smem:[#allocation12_spill]] }
 0x1be   : > { %s1603_s25 = sld [smem:[#allocation13_spill]]  ;;  %s1604_s21 = sld [smem:[#allocation14_spill]] }
 0x1bf   : > { %s1606_s9 = smov %s1099_s10  ;;  %s1607_s10 = smov %s1103_s11 }
 0x1c0   : > { %s1608_s11 = smov %s1364_s0  ;;  %s1609_s12 = smov %s1111_s13 }
 0x1c1   : > { %s1610_s13 = smov %s1115_s14  ;;  %s1611_s14 = smov %s1346_s15 }
 0x1c2   : > { %s1612_s15 = smov %s1123_s16  ;;  %s1613_s16 = smov %s1127_s17 }
 0x1c3   : > { %s1614_s17 = smov %s1361_s4  ;;  %20 = sbr.rel (!%p1515_p8) target bundleno = 14 (0xe), region = 86 }
 0x1c4   : > { %s1615_s20 = smov %s1603_s25 }
 0x1ca   :  { %562 = vsyncpa [#allocation3], 1 }
 0x1cb   :  { %564 = vsyncpa [#allocation3 + $0x1], 1 }
 0x1cc   :  { %565 = vsyncpa [#allocation6], 1 }
 0x1cd   :  { %567 = vsyncpa [#allocation6 + $0x1], 1 }
 0x1ce   :  { %568 = vsyncpa [#allocation4], 1 }
 0x1cf   :  { %570 = vsyncpa [#allocation4 + $0x1], 1 }

</bundles_post_ra>
